<compile_context>
chip_gen: v5e
topology: v5e:2x2
jax: 0.10.0
libtpu: 0.0.40
codegen_flags: <defaults>
</compile_context>

<pallas_src>
import functools

import jax
import jax.numpy as jnp
from jax.experimental import pallas as pl
from jax.experimental.pallas import tpu as pltpu

HIDDEN = 128     # hidden width of the shared MLP (matches the torch module)
K_PAD = 128      # padded input-feature width (lane-friendly, holds ones col)
HEAD_PAD = 128   # padded fused-head output width (lane-dense store)


def _round_up(n, m):
    return ((n + m - 1) // m) * m


def _actor_critic_kernel(n_actions,
                         x_ref, w1_ref, w2_ref, b2_ref, wh_ref, bh_ref,
                         out_ref):
    # x: (TB, K_PAD) bf16; last real feature column is the constant 1.0 used to
    # fold the layer-1 bias into w1.
    x = x_ref[...]

    # shared layer 1: Linear (bias folded) -> ReLU, f32 accumulate
    h1 = jnp.dot(x, w1_ref[...], preferred_element_type=jnp.float32)
    h1 = jnp.maximum(h1, 0.0)

    # shared layer 2: Linear -> ReLU
    h2 = jnp.dot(h1.astype(w2_ref.dtype), w2_ref[...],
                 preferred_element_type=jnp.float32) + b2_ref[...]
    h2 = jnp.maximum(h2, 0.0)

    # fused heads: one lane-dense matmul.
    # lanes [0, n_actions)  -> actor logits
    # lane  n_actions       -> critic value
    # lanes > n_actions     -> zero padding
    head = jnp.dot(h2.astype(wh_ref.dtype), wh_ref[...],
                   preferred_element_type=jnp.float32) + bh_ref[...]

    lane = jax.lax.broadcasted_iota(jnp.int32, head.shape, 1)
    actor_mask = lane < n_actions

    # masked, max-stabilised softmax over the actor lanes only
    logits = jnp.where(actor_mask, head, -jnp.inf)
    m = jnp.max(logits, axis=-1, keepdims=True)
    e = jnp.exp(logits - m)                       # 0 outside actor lanes
    denom = jnp.sum(e, axis=-1, keepdims=True)
    probs = e * pl.reciprocal(denom, approx=True)  # EUP, ~free

    # single lane-dense (TB, 128) store: probs in actor lanes, raw head
    # (i.e. the critic value / zero padding) elsewhere.
    out_ref[...] = jnp.where(actor_mask, probs, head).astype(out_ref.dtype)


def actor_critic_forward(x, params, *, tile_b=512):
    """x: (B, input_size) float32. Returns (probs (B, n_actions), value (B, 1))."""
    w1, b1, w2, b2, wa, ba, wc, bc = params
    input_size = w1.shape[0]
    n_actions = wa.shape[1]
    B = x.shape[0]
    assert input_size < K_PAD, "input_size must leave room for the bias column"
    assert n_actions < HEAD_PAD

    # batch tile: multiple of 8 (f32 sublane); small batches -> single tile.
    TB = tile_b if B >= tile_b else _round_up(max(B, 1), 8)
    B_pad = _round_up(B, TB)

    # ---- pad / repack parameters (pure-JAX plumbing, fused by XLA) ----------
    # x: zero-pad features to K_PAD, set a ones column for the bias fold.
    x_pad = jnp.zeros((B_pad, K_PAD), jnp.float32)
    x_pad = x_pad.at[:B, :input_size].set(x.astype(jnp.float32))
    x_pad = x_pad.at[:, input_size].set(1.0)

    # layer-1 weight with the bias folded in as an extra input row.
    w1_aug = jnp.zeros((K_PAD, HIDDEN), jnp.float32)
    w1_aug = w1_aug.at[:input_size].set(w1)
    w1_aug = w1_aug.at[input_size].set(b1.reshape(-1))

    # fused, lane-dense head weight/bias: actor cols, then critic col, zero pad.
    w_heads = jnp.zeros((HIDDEN, HEAD_PAD), jnp.float32)
    w_heads = w_heads.at[:, :n_actions].set(wa)
    w_heads = w_heads.at[:, n_actions].set(wc.reshape(-1))
    b_heads = jnp.zeros((1, HEAD_PAD), jnp.float32)
    b_heads = b_heads.at[:, :n_actions].set(ba.reshape(1, -1))
    b_heads = b_heads.at[:, n_actions].set(bc.reshape(-1))

    # bf16 MXU operands, f32 accumulation in-kernel; biases stay f32.
    x_bf = x_pad.astype(jnp.bfloat16)
    w1_bf = w1_aug.astype(jnp.bfloat16)
    w2_bf = w2.astype(jnp.bfloat16)
    wh_bf = w_heads.astype(jnp.bfloat16)
    b2_f32 = b2.reshape(1, HIDDEN).astype(jnp.float32)

    grid = (B_pad // TB,)

    flops = 2 * B_pad * (K_PAD * HIDDEN + HIDDEN * HIDDEN + HIDDEN * HEAD_PAD)
    bytes_accessed = (x_bf.size * 2 + w1_bf.size * 2 + w2_bf.size * 2
                      + wh_bf.size * 2 + b2_f32.size * 4 + b_heads.size * 4
                      + B_pad * HEAD_PAD * 4)

    out = pl.pallas_call(
        functools.partial(_actor_critic_kernel, n_actions),
        out_shape=jax.ShapeDtypeStruct((B_pad, HEAD_PAD), jnp.float32),
        grid=grid,
        in_specs=[
            pl.BlockSpec((TB, K_PAD), lambda i: (i, 0)),        # x tile
            pl.BlockSpec((K_PAD, HIDDEN), lambda i: (0, 0)),    # w1 (resident)
            pl.BlockSpec((HIDDEN, HIDDEN), lambda i: (0, 0)),   # w2 (resident)
            pl.BlockSpec((1, HIDDEN), lambda i: (0, 0)),        # b2 (resident)
            pl.BlockSpec((HIDDEN, HEAD_PAD), lambda i: (0, 0)),  # fused head W
            pl.BlockSpec((1, HEAD_PAD), lambda i: (0, 0)),       # fused head b
        ],
        out_specs=pl.BlockSpec((TB, HEAD_PAD), lambda i: (i, 0)),
        compiler_params=pltpu.CompilerParams(
            dimension_semantics=("parallel",),       # megacore batch sharding
            vmem_limit_bytes=32 * 1024 * 1024,
        ),
        cost_estimate=pl.CostEstimate(
            flops=flops,
            transcendentals=B_pad * HEAD_PAD,
            bytes_accessed=bytes_accessed,
        ),
    )(x_bf, w1_bf, w2_bf, b2_f32, wh_bf, b_heads)

    probs = out[:B, :n_actions]
    value = out[:B, n_actions:n_actions + 1]
    return probs, value


def init_params(key, input_size, n_actions):
    """Deterministic init mimicking PyTorch Linear default (uniform +/- 1/sqrt(fan_in))."""
    def linear(key, fan_in, fan_out):
        kw, kb = jax.random.split(key)
        bound = 1.0 / jnp.sqrt(fan_in)
        # stored as (in, out) so kernel does x @ W
        w = jax.random.uniform(kw, (fan_in, fan_out), jnp.float32, -bound, bound)
        b = jax.random.uniform(kb, (1, fan_out), jnp.float32, -bound, bound)
        return w, b

    k1, k2, k3, k4 = jax.random.split(key, 4)
    w1, b1 = linear(k1, input_size, HIDDEN)
    w2, b2 = linear(k2, HIDDEN, HIDDEN)
    wa, ba = linear(k3, HIDDEN, n_actions)
    wc, bc = linear(k4, HIDDEN, 1)
    return (w1, b1, w2, b2, wa, ba, wc, bc)


def reference_forward(x, params):
    """Pure-JAX f32 reference matching the PyTorch module."""
    w1, b1, w2, b2, wa, ba, wc, bc = params
    h1 = jnp.maximum(x @ w1 + b1, 0.0)
    h2 = jnp.maximum(h1 @ w2 + b2, 0.0)
    probs = jax.nn.softmax(h2 @ wa + ba, axis=-1)
    value = h2 @ wc + bc
    return probs, value


if __name__ == "__main__":
    # LunarLander-like sizes: observation dim 8, 4 discrete actions, batch 8.
    input_size = 8
    n_actions = 4
    batch = 8

    key = jax.random.PRNGKey(0)
    kx, kp = jax.random.split(key)
    x = jax.random.normal(kx, (batch, input_size), jnp.float32)
    params = init_params(kp, input_size, n_actions)

    probs, value = jax.jit(actor_critic_forward)(x, params)
    jax.block_until_ready((probs, value))

    # sanity: shapes match torch semantics, softmax rows sum to ~1
    assert probs.shape == (batch, n_actions)
    assert value.shape == (batch, 1)
    assert jnp.allclose(jnp.sum(probs, axis=-1), 1.0, atol=2e-3)

    # compare against the f32 reference (bf16 operands + approx reciprocal
    # introduce small deviations, so tolerances are loose but meaningful).
    ref_probs, ref_value = reference_forward(x, params)
    assert jnp.allclose(probs, ref_probs, atol=5e-2, rtol=5e-2)
    assert jnp.allclose(value, ref_value, atol=5e-2, rtol=5e-2)

    print("KERNEL_OK")
</pallas_src>

<mosaic_0001>
module attributes {stable_mosaic.version = 11 : i64} {
  func.func @_actor_critic_kernel(%arg0: i32, %arg1: memref<8x128xbf16, #tpu.memory_space<vmem>>, %arg2: memref<128x128xbf16, #tpu.memory_space<vmem>>, %arg3: memref<128x128xbf16, #tpu.memory_space<vmem>>, %arg4: memref<1x128xf32, #tpu.memory_space<vmem>>, %arg5: memref<128x128xbf16, #tpu.memory_space<vmem>>, %arg6: memref<1x128xf32, #tpu.memory_space<vmem>>, %arg7: memref<8x128xf32, #tpu.memory_space<vmem>>) attributes {dimension_semantics = [#tpu.dimension_semantics<parallel>], iteration_bounds = array<i64: 1>, scalar_prefetch = 0 : i64, scratch_operands = 0 : i64, tpu.core_type = #tpu.core_type<tc>, window_params = [{transform_indices = @transform_0, window_bounds = array<i64: 8, 128>}, {pipeline_mode = #tpu.pipeline_mode<synchronous>, transform_indices = @transform_1, window_bounds = array<i64: 128, 128>}, {pipeline_mode = #tpu.pipeline_mode<synchronous>, transform_indices = @transform_2, window_bounds = array<i64: 128, 128>}, {pipeline_mode = #tpu.pipeline_mode<synchronous>, transform_indices = @transform_3, window_bounds = array<i64: 1, 128>}, {pipeline_mode = #tpu.pipeline_mode<synchronous>, transform_indices = @transform_4, window_bounds = array<i64: 128, 128>}, {pipeline_mode = #tpu.pipeline_mode<synchronous>, transform_indices = @transform_5, window_bounds = array<i64: 1, 128>}, {transform_indices = @transform_6, window_bounds = array<i64: 8, 128>}]} {
    %c0 = arith.constant 0 : index
    %c0_0 = arith.constant 0 : index
    %0 = vector.load %arg1[%c0, %c0_0] : memref<8x128xbf16, #tpu.memory_space<vmem>>, vector<8x128xbf16>
    %c0_1 = arith.constant 0 : index
    %c0_2 = arith.constant 0 : index
    %1 = vector.load %arg2[%c0_1, %c0_2] : memref<128x128xbf16, #tpu.memory_space<vmem>>, vector<128x128xbf16>
    %cst = arith.constant dense<0.000000e+00> : vector<8x128xf32>
    %2 = tpu.matmul %0, %1, %cst {dimension_numbers = #tpu.dot_dimension_numbers<[1], [0], [0], [1], [0, 0, 1, 1], [], []>} : vector<8x128xbf16>, vector<128x128xbf16>, vector<8x128xf32> -> vector<8x128xf32>
    %cst_3 = arith.constant 0.000000e+00 : f32
    %3 = vector.broadcast %cst_3 : f32 to vector<8x128xf32>
    %4 = arith.maximumf %2, %3 : vector<8x128xf32>
    %5 = arith.truncf %4 : vector<8x128xf32> to vector<8x128xbf16>
    %c0_4 = arith.constant 0 : index
    %c0_5 = arith.constant 0 : index
    %6 = vector.load %arg3[%c0_4, %c0_5] : memref<128x128xbf16, #tpu.memory_space<vmem>>, vector<128x128xbf16>
    %cst_6 = arith.constant dense<0.000000e+00> : vector<8x128xf32>
    %7 = tpu.matmul %5, %6, %cst_6 {dimension_numbers = #tpu.dot_dimension_numbers<[1], [0], [0], [1], [0, 0, 1, 1], [], []>} : vector<8x128xbf16>, vector<128x128xbf16>, vector<8x128xf32> -> vector<8x128xf32>
    %c0_7 = arith.constant 0 : index
    %c0_8 = arith.constant 0 : index
    %8 = vector.load %arg4[%c0_7, %c0_8] : memref<1x128xf32, #tpu.memory_space<vmem>>, vector<1x128xf32>
    %9 = vector.broadcast %8 : vector<1x128xf32> to vector<8x128xf32>
    %10 = arith.addf %7, %9 : vector<8x128xf32>
    %cst_9 = arith.constant 0.000000e+00 : f32
    %11 = vector.broadcast %cst_9 : f32 to vector<8x128xf32>
    %12 = arith.maximumf %10, %11 : vector<8x128xf32>
    %13 = arith.truncf %12 : vector<8x128xf32> to vector<8x128xbf16>
    %c0_10 = arith.constant 0 : index
    %c0_11 = arith.constant 0 : index
    %14 = vector.load %arg5[%c0_10, %c0_11] : memref<128x128xbf16, #tpu.memory_space<vmem>>, vector<128x128xbf16>
    %cst_12 = arith.constant dense<0.000000e+00> : vector<8x128xf32>
    %15 = tpu.matmul %13, %14, %cst_12 {dimension_numbers = #tpu.dot_dimension_numbers<[1], [0], [0], [1], [0, 0, 1, 1], [], []>} : vector<8x128xbf16>, vector<128x128xbf16>, vector<8x128xf32> -> vector<8x128xf32>
    %c0_13 = arith.constant 0 : index
    %c0_14 = arith.constant 0 : index
    %16 = vector.load %arg6[%c0_13, %c0_14] : memref<1x128xf32, #tpu.memory_space<vmem>>, vector<1x128xf32>
    %17 = vector.broadcast %16 : vector<1x128xf32> to vector<8x128xf32>
    %18 = arith.addf %15, %17 : vector<8x128xf32>
    %19 = tpu.iota {dimensions = array<i32: 1>} : vector<8x128xi32>
    %c4_i32 = arith.constant 4 : i32
    %20 = vector.broadcast %c4_i32 : i32 to vector<8x128xi32>
    %21 = arith.cmpi slt, %19, %20 : vector<8x128xi32>
    %cst_15 = arith.constant 0xFF800000 : f32
    %22 = vector.broadcast %cst_15 : f32 to vector<8x128xf32>
    %23 = arith.select %21, %18, %22 : vector<8x128xi1>, vector<8x128xf32>
    %cst_16 = arith.constant dense<0xFF800000> : vector<8xf32>
    %24 = vector.multi_reduction <maximumf>, %23, %cst_16 [1] : vector<8x128xf32> to vector<8xf32>
    %25 = vector.shape_cast %24 : vector<8xf32> to vector<8x1xf32>
    %26 = vector.broadcast %25 : vector<8x1xf32> to vector<8x128xf32>
    %27 = arith.subf %23, %26 : vector<8x128xf32>
    %28 = math.exp %27 : vector<8x128xf32>
    %cst_17 = arith.constant dense<0.000000e+00> : vector<8xf32>
    %29 = vector.multi_reduction <add>, %28, %cst_17 [1] : vector<8x128xf32> to vector<8xf32>
    %30 = vector.shape_cast %29 : vector<8xf32> to vector<8x1xf32>
    %31 = tpu.reciprocal %30 {approx = true} : vector<8x1xf32> -> vector<8x1xf32>
    %32 = vector.broadcast %31 : vector<8x1xf32> to vector<8x128xf32>
    %33 = arith.mulf %28, %32 : vector<8x128xf32>
    %34 = arith.select %21, %33, %18 : vector<8x128xi1>, vector<8x128xf32>
    %c0_18 = arith.constant 0 : index
    %c0_19 = arith.constant 0 : index
    %35 = vector.load %arg7[%c0_18, %c0_19] : memref<8x128xf32, #tpu.memory_space<vmem>>, vector<8x128xf32>
    tpu.vector_store %arg7[%c0_18, %c0_19], %34 {strides = array<i32>} : memref<8x128xf32, #tpu.memory_space<vmem>>, vector<8x128xf32>,
    return
  }
  func.func @transform_0(%arg0: i32) -> (i32, i32) {
    %c0_i32 = arith.constant 0 : i32
    %c0_i32_0 = arith.constant 0 : i32
    return %arg0, %c0_i32 : i32, i32
  }
  func.func @transform_1(%arg0: i32) -> (i32, i32) {
    %c0_i32 = arith.constant 0 : i32
    %c0_i32_0 = arith.constant 0 : i32
    %c0_i32_1 = arith.constant 0 : i32
    return %c0_i32, %c0_i32_0 : i32, i32
  }
  func.func @transform_2(%arg0: i32) -> (i32, i32) {
    %c0_i32 = arith.constant 0 : i32
    %c0_i32_0 = arith.constant 0 : i32
    %c0_i32_1 = arith.constant 0 : i32
    return %c0_i32, %c0_i32_0 : i32, i32
  }
  func.func @transform_3(%arg0: i32) -> (i32, i32) {
    %c0_i32 = arith.constant 0 : i32
    %c0_i32_0 = arith.constant 0 : i32
    %c0_i32_1 = arith.constant 0 : i32
    return %c0_i32, %c0_i32_0 : i32, i32
  }
  func.func @transform_4(%arg0: i32) -> (i32, i32) {
    %c0_i32 = arith.constant 0 : i32
    %c0_i32_0 = arith.constant 0 : i32
    %c0_i32_1 = arith.constant 0 : i32
    return %c0_i32, %c0_i32_0 : i32, i32
  }
  func.func @transform_5(%arg0: i32) -> (i32, i32) {
    %c0_i32 = arith.constant 0 : i32
    %c0_i32_0 = arith.constant 0 : i32
    %c0_i32_1 = arith.constant 0 : i32
    return %c0_i32, %c0_i32_0 : i32, i32
  }
  func.func @transform_6(%arg0: i32) -> (i32, i32) {
    %c0_i32 = arith.constant 0 : i32
    %c0_i32_0 = arith.constant 0 : i32
    return %arg0, %c0_i32 : i32, i32
  }
}

</mosaic_0001>

<bundles_post_ra>
// kernel: actor_critic_forward.1
= control target key start
LH: loop header
LB: loop body
LE: loop exit
PB: predicated region body
PF: predicated region fallthrough
CT: control target
= control target key end

     0   :  { %v267_v35 = vlaneseq  ;;  %s533_s1 = inlined_call_operand.vmem [shape: bf16[128,128], index: 1, kind: input, shape index: {}]   ;;  %s534_s2 = inlined_call_operand.vmem [shape: bf16[128,128], index: 2, kind: input, shape index: {}]   ;;  %s535_s0 = inlined_call_operand.vmem [shape: bf16[8,128], index: 0, kind: input, shape index: {}]   ;;  %s536_s3 = inlined_call_operand.vmem [shape: f32[1,128], index: 3, kind: input, shape index: {}]   ;;  %s537_s4 = inlined_call_operand.vmem [shape: bf16[128,128], index: 4, kind: input, shape index: {}]   ;;  %s538_s5 = inlined_call_operand.vmem [shape: f32[1,128], index: 5, kind: input, shape index: {}]   ;;  %s539_s6 = inlined_call_operand.vmem [shape: f32[8,128], index: 6, kind: output, shape index: {}]  }
   0x1   :  { %v389_v0 = vld [vmem:[%s533_s1 + $0x38] sm:$0xff]  ;;  %v388_v1 = vld [vmem:[%s533_s1 + $0x30] sm:$0xff]  ;;  %v387_v4 = vld [vmem:[%s533_s1 + $0x28] sm:$0xff] }
   0x2   :  { %88 = vmatpush.bf16.msra.mxu0 %v389_v0  ;;  %v397_v2 = vld [vmem:[%s534_s2 + $0x38] sm:$0xff]  ;;  %v396_v3 = vld [vmem:[%s534_s2 + $0x30] sm:$0xff]  ;;  %v395_v5 = vld [vmem:[%s534_s2 + $0x28] sm:$0xff]  ;;  %v268_v36 = vand.u32 127, %v267_v35 }
   0x3   :  { %171 = vmatpush.bf16.msra.mxu1 %v397_v2  ;;  %v386_v6 = vld [vmem:[%s533_s1 + $0x20] sm:$0xff]  ;;  %v385_v8 = vld [vmem:[%s533_s1 + $0x18] sm:$0xff]  ;;  %v384_v10 = vld [vmem:[%s533_s1 + $0x10] sm:$0xff] }
   0x4   :  { %v394_v7 = vld [vmem:[%s534_s2 + $0x20] sm:$0xff]  ;;  %v393_v9 = vld [vmem:[%s534_s2 + $0x18] sm:$0xff]  ;;  %v392_v11 = vld [vmem:[%s534_s2 + $0x10] sm:$0xff]  ;;  %vm269_vm0 = vcmp.lt.s32.totalorder %v268_v36, 4 }
   0x5   :  { %v383_v12 = vld [vmem:[%s533_s1 + $0x8] sm:$0xff]  ;;  %v382_v14 = vld [vmem:[%s533_s1] sm:$0xff]  ;;  %v405_v17 = vld [vmem:[%s537_s4 + $0x38] sm:$0xff] }
   0x6   :  { %89 = vmatpush.bf16.msra.mxu0 %v388_v1  ;;  %v391_v13 = vld [vmem:[%s534_s2 + $0x8] sm:$0xff]  ;;  %v23_v15 = vld [vmem:[%s535_s0] sm:$0xf]  ;;  %254 = vmatpush.bf16.msra.mxu2 %v405_v17  ;;  %v404_v18 = vld [vmem:[%s537_s4 + $0x30] sm:$0xff] }
   0x7   :  { %172 = vmatpush.bf16.msra.mxu1 %v396_v3  ;;  %v390_v16 = vld [vmem:[%s534_s2] sm:$0xff]  ;;  %v403_v19 = vld [vmem:[%s537_s4 + $0x28] sm:$0xff]  ;;  %v401_v21 = vld [vmem:[%s537_s4 + $0x18] sm:$0xff] }
   0x8   :  { %v402_v20 = vld [vmem:[%s537_s4 + $0x20] sm:$0xff]  ;;  %v400_v22 = vld [vmem:[%s537_s4 + $0x10] sm:$0xff]  ;;  %v399_v27 = vld [vmem:[%s537_s4 + $0x8] sm:$0xff] }
   0x9   :  { %v398_v28 = vld [vmem:[%s537_s4] sm:$0xff] }
   0xa   :  { %90 = vmatpush.bf16.msra.mxu0 %v387_v4  ;;  %255 = vmatpush.bf16.msra.mxu2 %v404_v18  ;;  %v406_v29 = vld [vmem:[%s536_s3] ss:$0 sm:$0xff] }
   0xb   :  { %173 = vmatpush.bf16.msra.mxu1 %v395_v5  ;;  %v407_v37 = vld [vmem:[%s538_s5] ss:$0 sm:$0xff] }
   0xe   :  { %91 = vmatpush.bf16.msra.mxu0 %v386_v6  ;;  %256 = vmatpush.bf16.msra.mxu2 %v403_v19 }
   0xf   :  { %174 = vmatpush.bf16.msra.mxu1 %v394_v7 }
  0x12   :  { %92 = vmatpush.bf16.msra.mxu0 %v385_v8  ;;  %257 = vmatpush.bf16.msra.mxu2 %v402_v20 }
  0x13   :  { %175 = vmatpush.bf16.msra.mxu1 %v393_v9 }
  0x16   :  { %93 = vmatpush.bf16.msra.mxu0 %v384_v10  ;;  %258 = vmatpush.bf16.msra.mxu2 %v401_v21 }
  0x17   :  { %176 = vmatpush.bf16.msra.mxu1 %v392_v11 }
  0x1a   :  { %94 = vmatpush.bf16.msra.mxu0 %v383_v12  ;;  %259 = vmatpush.bf16.msra.mxu2 %v400_v22 }
  0x1b   :  { %177 = vmatpush.bf16.msra.mxu1 %v391_v13 }
  0x1e   :  { %95 = vmatpush.bf16.msra.mxu0 %v382_v14  ;;  %260 = vmatpush.bf16.msra.mxu2 %v399_v27 }
  0x1f   :  { %178 = vmatpush.bf16.msra.mxu1 %v390_v16 }
  0x21   :  { %96 = vmatmul.bf16.vlgmr.msra.gmra.mxu0 %v23_v15 }
  0x22   :  { %261 = vmatpush.bf16.msra.mxu2 %v398_v28 }
  0x9e   :  { %v97_v23 = vpop.f32.mrf.mxu0 }
  0x9f   :  { %v101_v24 = vmax.f32 %v97_v23, 0.0 }
  0xa1   :  { %v102_v25 = vpack.c.bf16 %v101_v24, %v101_v24 }
  0xa3   :  { %179 = vmatmul.bf16.vlgmr.msra.gmra.mxu1 %v102_v25 }
  0xa6   :  { %v99_v26 = vpop.f32.mrf.mxu0 }
 0x120   :  { %v180_v30 = vpop.f32.mrf.mxu1 }
 0x121   :  { %v181_v31 = vadd.f32 %v406_v29, %v180_v30 }
 0x123   :  { %v184_v32 = vmax.f32 %v181_v31, 0.0 }
 0x125   :  { %v185_v33 = vpack.c.bf16 %v184_v32, %v184_v32 }
 0x127   :  { %262 = vmatmul.bf16.vlgmr.msra.gmra.mxu2 %v185_v33 }
 0x128   :  { %v182_v34 = vpop.f32.mrf.mxu1 }
 0x1aa   :  { %v263_v38 = vpop.f32.mrf.mxu2 }
 0x1ab   :  { %v264_v39 = vadd.f32 %v407_v37, %v263_v38 }
 0x1ad   :  { %v270_v40 = vsel %vm269_vm0, %v264_v39, -inf }
 0x1ae   :  { %271 = vmax.xlane.f32.xlu0 %v270_v40 }
 0x1b2   :  { %v265_v41 = vpop.f32.mrf.mxu2 }
 0x221   :  { %v272_v42 = vpop.xlane.xlu0 %271 }
 0x222   :  { %v273_v43 = vsub.f32 %v270_v40, %v272_v42 }
 0x224   :  { %v274_v44 = vmul.f32 1.442695, %v273_v43 }
 0x226   :  { %408 = vpow2.f32 %v274_v44 }
 0x22c   :  { %v409_v45 = vpop.eup %408 }
 0x22d   :  { %276 = vadd.xlane.f32.xlu0 %v409_v45 }
 0x2a0   :  { %v277_v46 = vpop.xlane.xlu0 %276 }
 0x2a1   :  { %410 = vrcp.f32 %v277_v46 }
 0x2a7   :  { %v411_v47 = vpop.eup %410 }
 0x2a8   :  { %v279_v48 = vmul.f32 %v411_v47, %v409_v45 }
 0x2aa   :  { %v280_v49 = vsel %vm269_vm0, %v279_v48, %v264_v39 }
 0x2ab   :  { %281 = vst [vmem:[%s539_s6] sm:$0xff] %v280_v49 }

</bundles_post_ra>
